<compile_context>
chip_gen: v7x
topology: tpu7x:2x2x1
jax: 0.10.0
libtpu: 0.0.40
codegen_flags: <defaults>
</compile_context>

<pallas_src>
import functools

import jax
import jax.numpy as jnp
from jax.experimental import pallas as pl
from jax.experimental.pallas import tpu as pltpu


# ----------------------------------------------------------------------------
# Wrapper-side static prep
# ----------------------------------------------------------------------------
def _prep_input(x_nchw):
    """NCHW -> zero-row-padded super-row layout: (N, H/2 + 1, 2*W*C).

    Super-row u holds padded rows 2u and 2u+1 back to back along lanes; padded
    row p corresponds to data row p-1 (padded rows 0 and H+1 are the zero halo).
    Left/right zero pad columns are NOT stored; they are folded into the
    block-Toeplitz weight matrices.
    """
    n, nc, h, w = x_nchw.shape
    x = jnp.transpose(x_nchw, (0, 2, 3, 1)).reshape(n, h, w * nc)  # rows x (W*C)
    x = jnp.pad(x, ((0, 0), (1, 1), (0, 0)))                       # zero halo rows
    return x.reshape(n, (h + 2) // 2, 2 * w * nc)                  # super-rows


def _build_pair_matrices(w_oihw, s_in, dtype=jnp.float32):
    """PyTorch (Cout, Cin, 4, 4) weight -> (2, 2*s_in*Cin, s_out*Cout) matrices.

    Matrix j realizes kernel rows (2j, 2j+1) of the k=4/s=2/p=1 conv: it maps one
    input super-row (two adjacent padded rows, unpadded columns, channel-fastest)
    to all s_out output columns.  W-padding is folded in (taps that would read
    the left/right zero pad get zero rows).
    """
    co, ci, kh, kw = w_oihw.shape
    s_out = s_in // 2
    col = jnp.arange(s_in)[:, None, None]                   # unpadded input column
    tap = jnp.arange(kw)[None, :, None]                     # kw tap
    ow = jnp.arange(s_out)[None, None, :]                   # output column
    # output ow, tap kw reads unpadded column 2*ow + kw - 1 (p=1 folded)
    sel = (col == (2 * ow + tap - 1)).astype(w_oihw.dtype)  # (s_in, 4, s_out)
    wt = jnp.transpose(w_oihw, (2, 3, 1, 0))                # (kh, kw, Cin, Cout)
    m = jnp.einsum('wto,ktcd->kwcod', sel, wt)              # (4, s_in, Cin, s_out, Cout)
    m = m.reshape(4, s_in * ci, s_out * co)
    return m.reshape(2, 2 * s_in * ci, s_out * co).astype(dtype)


# ----------------------------------------------------------------------------
# The fused Pallas kernel: B batch samples per grid step, everything in VMEM
# ----------------------------------------------------------------------------
def _disc_kernel(x_ref, w1_ref, w2_ref, w3_ref, w4_ref, o_ref,
                 a2_ref, a3_ref, a4_ref, *, batch, spatial, chans, final_reduce):
    B = batch
    s = spatial
    c = chans

    def conv_pair(read, w_ref, s_out, relu):
        # read(u, m) -> (B, m, 2*s_in*c_in): super-rows [u, u+m) of every sample.
        # Two fused matmuls (kernel rows {0,1} and {2,3}); B samples stacked
        # along M.
        w0 = w_ref[0]
        w1 = w_ref[1]
        x0 = read(0, s_out).reshape(B * s_out, -1).astype(w0.dtype)
        x1 = read(1, s_out).reshape(B * s_out, -1).astype(w1.dtype)
        y = (jnp.dot(x0, w0, preferred_element_type=jnp.float32)
             + jnp.dot(x1, w1, preferred_element_type=jnp.float32))
        if relu:
            y = jnp.maximum(y, 0.0)
        return y                                             # (B*s_out, s_out*c_out)

    def scatter(dst_ref, y, s_out, c_out):
        # Layer output row r -> padded row r+1 of the next buffer.
        #   even r -> second lane-half of super-rows [0, s_out/2)
        #   odd  r -> first  lane-half of super-rows [1, s_out/2 + 1)
        # Two bulk slab stores, then re-zero the two halo half-rows (padded
        # rows 0 and s_out+1).  Halos are zeroed every step (cheap) because
        # scratch is per-core/uninitialized and a "parallel" grid may never see
        # program_id()==0 on the second TensorCore.
        width = s_out * c_out
        half = s_out // 2
        y = y.reshape(B, half, 2, width)
        dst_ref[:, pl.ds(0, half), pl.ds(width, width)] = y[:, :, 0, :]
        dst_ref[:, pl.ds(1, half), pl.ds(0, width)] = y[:, :, 1, :]
        zero = jnp.zeros((B, 1, width), dst_ref.dtype)
        dst_ref[:, pl.ds(0, 1), pl.ds(0, width)] = zero           # padded row 0
        dst_ref[:, pl.ds(half, 1), pl.ds(width, width)] = zero    # padded row s_out+1

    # Layer 1 reads the already-prepped input block; layers 2-4 stay in VMEM.
    y1 = conv_pair(lambda u, m: x_ref[:, pl.ds(u, m), :], w1_ref, s[1], True)
    scatter(a2_ref, y1, s[1], c[1])

    y2 = conv_pair(lambda u, m: a2_ref[:, pl.ds(u, m), :], w2_ref, s[2], True)
    scatter(a3_ref, y2, s[2], c[2])

    y3 = conv_pair(lambda u, m: a3_ref[:, pl.ds(u, m), :], w3_ref, s[3], True)
    scatter(a4_ref, y3, s[3], c[3])

    if final_reduce:
        # Final spatial is 1x1: VPU multiply + lane reduction instead of an
        # N=1 MXU matmul.  Shapes kept 3-D so no relayouting reshape is needed.
        x0 = a4_ref[:, pl.ds(0, 1), :]                       # (B, 1, 2*s3*c3)
        x1 = a4_ref[:, pl.ds(1, 1), :]
        z = jnp.sum(x0 * w4_ref[0] + x1 * w4_ref[1],
                    axis=-1, keepdims=True)                  # (B, 1, 1)
        o_ref[...] = pl.reciprocal(1.0 + jnp.exp(-z), approx=True)
    else:
        y4 = conv_pair(lambda u, m: a4_ref[:, pl.ds(u, m), :], w4_ref, s[4], False)
        sig = pl.reciprocal(1.0 + jnp.exp(-y4), approx=True)
        o_ref[...] = sig.reshape(o_ref.shape)                # (B, s4, s4)


# ----------------------------------------------------------------------------
# Forward pass (matches the PyTorch module semantics)
# ----------------------------------------------------------------------------
def discriminator_forward(params, x_nchw, *, block_batch=8,
                          mxu_dtype=jnp.float32, vmem_budget_bytes=12 << 20):
    w1, w2, w3, w4 = (params["conv1"], params["conv2"],
                      params["conv3"], params["conv4"])
    n, nc, h, w = x_nchw.shape
    ndf = w1.shape[0]
    assert h == w and h % 16 == 0, "spatial size must be a multiple of 16"

    s = (h, h // 2, h // 4, h // 8, h // 16)      # spatial per layer boundary
    c = (nc, ndf, 2 * ndf, 4 * ndf, 1)            # channels per layer boundary

    m1 = _build_pair_matrices(w1, s[0], mxu_dtype)
    m2 = _build_pair_matrices(w2, s[1], mxu_dtype)
    m3 = _build_pair_matrices(w3, s[2], mxu_dtype)
    m4 = _build_pair_matrices(w4, s[3], mxu_dtype)
    final_reduce = (s[4] == 1)
    if final_reduce:
        m4 = jnp.transpose(m4, (0, 2, 1))         # (2, 1, 2*s3*c3) row vectors
    weight_elems = m1.size + m2.size + m3.size + m4.size

    def vmem_estimate(b):
        act = sum(b * (s[l] // 2 + 1) * 2 * s[l] * c[l] for l in (1, 2, 3))
        io = 2 * b * (s[0] // 2 + 1) * 2 * s[0] * nc + 2 * b * s[4] * s[4]
        return 4 * (act + io + 2 * weight_elems)

    # Pick the per-step batch B (review item: fill the MXU M dimension), capped
    # by a conservative cross-generation VMEM budget.
    B = max(1, min(block_batch, n))
    while B > 1 and vmem_estimate(B) > vmem_budget_bytes:
        B = (B + 1) // 2
    grid_n = -(-n // B)
    n_pad = grid_n * B

    x = _prep_input(x_nchw)
    if n_pad != n:
        x = jnp.pad(x, ((0, n_pad - n), (0, 0), (0, 0)))

    kernel = functools.partial(_disc_kernel, batch=B, spatial=s, chans=c,
                               final_reduce=final_reduce)

    flops = 0
    for l in (1, 2, 3, 4):
        flops += 2 * s[l] * (2 * s[l - 1] * c[l - 1]) * (s[l] * c[l]) * 2
    cost = pl.CostEstimate(
        flops=int(n_pad * flops),
        transcendentals=int(n_pad * s[4] * s[4]),
        bytes_accessed=int(4 * (x.size + weight_elems + n_pad * s[4] * s[4])))

    out = pl.pallas_call(
        kernel,
        out_shape=jax.ShapeDtypeStruct((n_pad, s[4], s[4]), jnp.float32),
        grid=(grid_n,),
        in_specs=[
            pl.BlockSpec((B,) + x.shape[1:], lambda g: (g, 0, 0)),
            pl.BlockSpec(m1.shape, lambda g: (0, 0, 0)),
            pl.BlockSpec(m2.shape, lambda g: (0, 0, 0)),
            pl.BlockSpec(m3.shape, lambda g: (0, 0, 0)),
            pl.BlockSpec(m4.shape, lambda g: (0, 0, 0)),
        ],
        out_specs=pl.BlockSpec((B, s[4], s[4]), lambda g: (g, 0, 0)),
        scratch_shapes=[
            pltpu.VMEM((B, s[1] // 2 + 1, 2 * s[1] * c[1]), jnp.float32),
            pltpu.VMEM((B, s[2] // 2 + 1, 2 * s[2] * c[2]), jnp.float32),
            pltpu.VMEM((B, s[3] // 2 + 1, 2 * s[3] * c[3]), jnp.float32),
        ],
        compiler_params=pltpu.CompilerParams(
            dimension_semantics=("parallel",),
            vmem_limit_bytes=int(min(max(2 * vmem_estimate(B), 16 << 20), 64 << 20)),
        ),
        cost_estimate=cost,
    )(x, m1, m2, m3, m4)

    # PyTorch: output.view(-1, 1).squeeze(1)
    return out[:n].reshape(-1)


# ----------------------------------------------------------------------------
# Params + pure-JAX reference for a silent correctness check
# ----------------------------------------------------------------------------
def init_params(key, nc=1, ndf=8):
    """PyTorch-layout conv weights (Cout, Cin, 4, 4), no biases."""
    k1, k2, k3, k4 = jax.random.split(key, 4)
    std = 0.2
    return {
        "conv1": jax.random.normal(k1, (ndf, nc, 4, 4), jnp.float32) * std,
        "conv2": jax.random.normal(k2, (ndf * 2, ndf, 4, 4), jnp.float32) * std,
        "conv3": jax.random.normal(k3, (ndf * 4, ndf * 2, 4, 4), jnp.float32) * std,
        "conv4": jax.random.normal(k4, (1, ndf * 4, 4, 4), jnp.float32) * std,
    }


def _reference_forward(params, x_nchw):
    def conv(x, w):
        return jax.lax.conv_general_dilated(
            x, w, window_strides=(2, 2), padding=((1, 1), (1, 1)),
            dimension_numbers=("NCHW", "OIHW", "NCHW"))
    x = jax.nn.relu(conv(x_nchw, params["conv1"]))
    x = jax.nn.relu(conv(x, params["conv2"]))
    x = jax.nn.relu(conv(x, params["conv3"]))
    x = jax.nn.sigmoid(conv(x, params["conv4"]))
    return x.reshape(-1)


if __name__ == "__main__":
    key = jax.random.PRNGKey(0)
    kx, kp = jax.random.split(key)

    # Small shapes: batch=6, nc=1, 16x16 spatial (16 -> 8 -> 4 -> 2 -> 1), ndf=8.
    # block_batch=4 -> B=4, grid=(2,): exercises batching, batch padding and
    # scratch reuse across grid steps.
    batch, nc, hw, ndf = 6, 1, 16, 8
    x = jax.random.normal(kx, (batch, nc, hw, hw), jnp.float32)
    params = init_params(kp, nc=nc, ndf=ndf)

    fwd = jax.jit(functools.partial(discriminator_forward, block_batch=4))
    out = jax.block_until_ready(fwd(params, x))
    ref = jax.block_until_ready(_reference_forward(params, x))

    assert out.shape == (batch,), out.shape
    assert jnp.allclose(out, ref, atol=1e-2, rtol=1e-2), (out, ref)
    print("KERNEL_OK")
</pallas_src>

<mosaic_0001>
module attributes {stable_mosaic.version = 11 : i64} {
  func.func @_disc_kernel(%arg0: i32, %arg1: memref<4x9x32xf32, #tpu.memory_space<vmem>>, %arg2: memref<2x32x64xf32, #tpu.memory_space<vmem>>, %arg3: memref<2x128x64xf32, #tpu.memory_space<vmem>>, %arg4: memref<2x128x64xf32, #tpu.memory_space<vmem>>, %arg5: memref<2x1x128xf32, #tpu.memory_space<vmem>>, %arg6: memref<4x1x1xf32, #tpu.memory_space<vmem>>, %arg7: memref<4x5x128xf32, #tpu.memory_space<vmem>>, %arg8: memref<4x3x128xf32, #tpu.memory_space<vmem>>, %arg9: memref<4x2x128xf32, #tpu.memory_space<vmem>>) attributes {dimension_semantics = [#tpu.dimension_semantics<parallel>], iteration_bounds = array<i64: 2>, scalar_prefetch = 0 : i64, scratch_operands = 3 : i64, tpu.core_type = #tpu.core_type<tc>, window_params = [{transform_indices = @transform_0, window_bounds = array<i64: 4, 9, 32>}, {pipeline_mode = #tpu.pipeline_mode<synchronous>, transform_indices = @transform_1, window_bounds = array<i64: 2, 32, 64>}, {pipeline_mode = #tpu.pipeline_mode<synchronous>, transform_indices = @transform_2, window_bounds = array<i64: 2, 128, 64>}, {pipeline_mode = #tpu.pipeline_mode<synchronous>, transform_indices = @transform_3, window_bounds = array<i64: 2, 128, 64>}, {pipeline_mode = #tpu.pipeline_mode<synchronous>, transform_indices = @transform_4, window_bounds = array<i64: 2, 1, 128>}, {transform_indices = @transform_5, window_bounds = array<i64: 4, 1, 1>}]} {
    %c0 = arith.constant 0 : index
    %c0_0 = arith.constant 0 : index
    %c0_1 = arith.constant 0 : index
    %0 = vector.load %arg2[%c0, %c0_0, %c0_1] : memref<2x32x64xf32, #tpu.memory_space<vmem>>, vector<1x32x64xf32>
    %1 = vector.shape_cast %0 : vector<1x32x64xf32> to vector<32x64xf32>
    %c1 = arith.constant 1 : index
    %c0_2 = arith.constant 0 : index
    %c0_3 = arith.constant 0 : index
    %2 = vector.load %arg2[%c1, %c0_2, %c0_3] : memref<2x32x64xf32, #tpu.memory_space<vmem>>, vector<1x32x64xf32>
    %3 = vector.shape_cast %2 : vector<1x32x64xf32> to vector<32x64xf32>
    %c0_4 = arith.constant 0 : index
    %c0_5 = arith.constant 0 : index
    %c0_6 = arith.constant 0 : index
    %4 = vector.load %arg1[%c0_4, %c0_5, %c0_6] : memref<4x9x32xf32, #tpu.memory_space<vmem>>, vector<4x8x32xf32>
    %5 = vector.shape_cast %4 : vector<4x8x32xf32> to vector<32x32xf32>
    %c0_7 = arith.constant 0 : index
    %c1_8 = arith.constant 1 : index
    %c0_9 = arith.constant 0 : index
    %6 = vector.load %arg1[%c0_7, %c1_8, %c0_9] : memref<4x9x32xf32, #tpu.memory_space<vmem>>, vector<4x8x32xf32>
    %7 = vector.shape_cast %6 : vector<4x8x32xf32> to vector<32x32xf32>
    %cst = arith.constant dense<0.000000e+00> : vector<32x64xf32>
    %8 = tpu.matmul %5, %1, %cst {dimension_numbers = #tpu.dot_dimension_numbers<[1], [0], [0], [1], [0, 0, 1, 1], [], []>} : vector<32x32xf32>, vector<32x64xf32>, vector<32x64xf32> -> vector<32x64xf32>
    %cst_10 = arith.constant dense<0.000000e+00> : vector<32x64xf32>
    %9 = tpu.matmul %7, %3, %cst_10 {dimension_numbers = #tpu.dot_dimension_numbers<[1], [0], [0], [1], [0, 0, 1, 1], [], []>} : vector<32x32xf32>, vector<32x64xf32>, vector<32x64xf32> -> vector<32x64xf32>
    %10 = arith.addf %8, %9 : vector<32x64xf32>
    %cst_11 = arith.constant 0.000000e+00 : f32
    %11 = vector.broadcast %cst_11 : f32 to vector<32x64xf32>
    %12 = arith.maximumf %10, %11 : vector<32x64xf32>
    %13 = vector.shape_cast %12 : vector<32x64xf32> to vector<4x4x2x64xf32>
    %14 = vector.extract_strided_slice %13 {offsets = [0, 0, 0, 0], sizes = [4, 4, 1, 64], strides = [1, 1, 1, 1]} : vector<4x4x2x64xf32> to vector<4x4x1x64xf32>
    %15 = vector.shape_cast %14 : vector<4x4x1x64xf32> to vector<4x4x64xf32>
    %c0_12 = arith.constant 0 : index
    %c0_13 = arith.constant 0 : index
    %c64 = arith.constant 64 : index
    %16 = vector.load %arg7[%c0_12, %c0_13, %c64] : memref<4x5x128xf32, #tpu.memory_space<vmem>>, vector<4x4x64xf32>
    tpu.vector_store %arg7[%c0_12, %c0_13, %c64], %15 {strides = array<i32>} : memref<4x5x128xf32, #tpu.memory_space<vmem>>, vector<4x4x64xf32>,
    %17 = vector.extract_strided_slice %13 {offsets = [0, 0, 1, 0], sizes = [4, 4, 1, 64], strides = [1, 1, 1, 1]} : vector<4x4x2x64xf32> to vector<4x4x1x64xf32>
    %18 = vector.shape_cast %17 : vector<4x4x1x64xf32> to vector<4x4x64xf32>
    %c0_14 = arith.constant 0 : index
    %c1_15 = arith.constant 1 : index
    %c0_16 = arith.constant 0 : index
    %19 = vector.load %arg7[%c0_14, %c1_15, %c0_16] : memref<4x5x128xf32, #tpu.memory_space<vmem>>, vector<4x4x64xf32>
    tpu.vector_store %arg7[%c0_14, %c1_15, %c0_16], %18 {strides = array<i32>} : memref<4x5x128xf32, #tpu.memory_space<vmem>>, vector<4x4x64xf32>,
    %cst_17 = arith.constant 0.000000e+00 : f32
    %20 = vector.broadcast %cst_17 : f32 to vector<4x1x64xf32>
    %c0_18 = arith.constant 0 : index
    %c0_19 = arith.constant 0 : index
    %c0_20 = arith.constant 0 : index
    %21 = vector.load %arg7[%c0_18, %c0_19, %c0_20] : memref<4x5x128xf32, #tpu.memory_space<vmem>>, vector<4x1x64xf32>
    tpu.vector_store %arg7[%c0_18, %c0_19, %c0_20], %20 {strides = array<i32>} : memref<4x5x128xf32, #tpu.memory_space<vmem>>, vector<4x1x64xf32>,
    %c0_21 = arith.constant 0 : index
    %c4 = arith.constant 4 : index
    %c64_22 = arith.constant 64 : index
    %22 = vector.load %arg7[%c0_21, %c4, %c64_22] : memref<4x5x128xf32, #tpu.memory_space<vmem>>, vector<4x1x64xf32>
    tpu.vector_store %arg7[%c0_21, %c4, %c64_22], %20 {strides = array<i32>} : memref<4x5x128xf32, #tpu.memory_space<vmem>>, vector<4x1x64xf32>,
    %c0_23 = arith.constant 0 : index
    %c0_24 = arith.constant 0 : index
    %c0_25 = arith.constant 0 : index
    %23 = vector.load %arg3[%c0_23, %c0_24, %c0_25] : memref<2x128x64xf32, #tpu.memory_space<vmem>>, vector<1x128x64xf32>
    %24 = vector.shape_cast %23 : vector<1x128x64xf32> to vector<128x64xf32>
    %c1_26 = arith.constant 1 : index
    %c0_27 = arith.constant 0 : index
    %c0_28 = arith.constant 0 : index
    %25 = vector.load %arg3[%c1_26, %c0_27, %c0_28] : memref<2x128x64xf32, #tpu.memory_space<vmem>>, vector<1x128x64xf32>
    %26 = vector.shape_cast %25 : vector<1x128x64xf32> to vector<128x64xf32>
    %c0_29 = arith.constant 0 : index
    %c0_30 = arith.constant 0 : index
    %c0_31 = arith.constant 0 : index
    %27 = vector.load %arg7[%c0_29, %c0_30, %c0_31] : memref<4x5x128xf32, #tpu.memory_space<vmem>>, vector<4x4x128xf32>
    %28 = vector.shape_cast %27 : vector<4x4x128xf32> to vector<16x128xf32>
    %c0_32 = arith.constant 0 : index
    %c1_33 = arith.constant 1 : index
    %c0_34 = arith.constant 0 : index
    %29 = vector.load %arg7[%c0_32, %c1_33, %c0_34] : memref<4x5x128xf32, #tpu.memory_space<vmem>>, vector<4x4x128xf32>
    %30 = vector.shape_cast %29 : vector<4x4x128xf32> to vector<16x128xf32>
    %cst_35 = arith.constant dense<0.000000e+00> : vector<16x64xf32>
    %31 = tpu.matmul %28, %24, %cst_35 {dimension_numbers = #tpu.dot_dimension_numbers<[1], [0], [0], [1], [0, 0, 1, 1], [], []>} : vector<16x128xf32>, vector<128x64xf32>, vector<16x64xf32> -> vector<16x64xf32>
    %cst_36 = arith.constant dense<0.000000e+00> : vector<16x64xf32>
    %32 = tpu.matmul %30, %26, %cst_36 {dimension_numbers = #tpu.dot_dimension_numbers<[1], [0], [0], [1], [0, 0, 1, 1], [], []>} : vector<16x128xf32>, vector<128x64xf32>, vector<16x64xf32> -> vector<16x64xf32>
    %33 = arith.addf %31, %32 : vector<16x64xf32>
    %cst_37 = arith.constant 0.000000e+00 : f32
    %34 = vector.broadcast %cst_37 : f32 to vector<16x64xf32>
    %35 = arith.maximumf %33, %34 : vector<16x64xf32>
    %36 = vector.shape_cast %35 : vector<16x64xf32> to vector<4x2x2x64xf32>
    %37 = vector.extract_strided_slice %36 {offsets = [0, 0, 0, 0], sizes = [4, 2, 1, 64], strides = [1, 1, 1, 1]} : vector<4x2x2x64xf32> to vector<4x2x1x64xf32>
    %38 = vector.shape_cast %37 : vector<4x2x1x64xf32> to vector<4x2x64xf32>
    %c0_38 = arith.constant 0 : index
    %c0_39 = arith.constant 0 : index
    %c64_40 = arith.constant 64 : index
    %39 = vector.load %arg8[%c0_38, %c0_39, %c64_40] : memref<4x3x128xf32, #tpu.memory_space<vmem>>, vector<4x2x64xf32>
    tpu.vector_store %arg8[%c0_38, %c0_39, %c64_40], %38 {strides = array<i32>} : memref<4x3x128xf32, #tpu.memory_space<vmem>>, vector<4x2x64xf32>,
    %40 = vector.extract_strided_slice %36 {offsets = [0, 0, 1, 0], sizes = [4, 2, 1, 64], strides = [1, 1, 1, 1]} : vector<4x2x2x64xf32> to vector<4x2x1x64xf32>
    %41 = vector.shape_cast %40 : vector<4x2x1x64xf32> to vector<4x2x64xf32>
    %c0_41 = arith.constant 0 : index
    %c1_42 = arith.constant 1 : index
    %c0_43 = arith.constant 0 : index
    %42 = vector.load %arg8[%c0_41, %c1_42, %c0_43] : memref<4x3x128xf32, #tpu.memory_space<vmem>>, vector<4x2x64xf32>
    tpu.vector_store %arg8[%c0_41, %c1_42, %c0_43], %41 {strides = array<i32>} : memref<4x3x128xf32, #tpu.memory_space<vmem>>, vector<4x2x64xf32>,
    %cst_44 = arith.constant 0.000000e+00 : f32
    %43 = vector.broadcast %cst_44 : f32 to vector<4x1x64xf32>
    %c0_45 = arith.constant 0 : index
    %c0_46 = arith.constant 0 : index
    %c0_47 = arith.constant 0 : index
    %44 = vector.load %arg8[%c0_45, %c0_46, %c0_47] : memref<4x3x128xf32, #tpu.memory_space<vmem>>, vector<4x1x64xf32>
    tpu.vector_store %arg8[%c0_45, %c0_46, %c0_47], %43 {strides = array<i32>} : memref<4x3x128xf32, #tpu.memory_space<vmem>>, vector<4x1x64xf32>,
    %c0_48 = arith.constant 0 : index
    %c2 = arith.constant 2 : index
    %c64_49 = arith.constant 64 : index
    %45 = vector.load %arg8[%c0_48, %c2, %c64_49] : memref<4x3x128xf32, #tpu.memory_space<vmem>>, vector<4x1x64xf32>
    tpu.vector_store %arg8[%c0_48, %c2, %c64_49], %43 {strides = array<i32>} : memref<4x3x128xf32, #tpu.memory_space<vmem>>, vector<4x1x64xf32>,
    %c0_50 = arith.constant 0 : index
    %c0_51 = arith.constant 0 : index
    %c0_52 = arith.constant 0 : index
    %46 = vector.load %arg4[%c0_50, %c0_51, %c0_52] : memref<2x128x64xf32, #tpu.memory_space<vmem>>, vector<1x128x64xf32>
    %47 = vector.shape_cast %46 : vector<1x128x64xf32> to vector<128x64xf32>
    %c1_53 = arith.constant 1 : index
    %c0_54 = arith.constant 0 : index
    %c0_55 = arith.constant 0 : index
    %48 = vector.load %arg4[%c1_53, %c0_54, %c0_55] : memref<2x128x64xf32, #tpu.memory_space<vmem>>, vector<1x128x64xf32>
    %49 = vector.shape_cast %48 : vector<1x128x64xf32> to vector<128x64xf32>
    %c0_56 = arith.constant 0 : index
    %c0_57 = arith.constant 0 : index
    %c0_58 = arith.constant 0 : index
    %50 = vector.load %arg8[%c0_56, %c0_57, %c0_58] : memref<4x3x128xf32, #tpu.memory_space<vmem>>, vector<4x2x128xf32>
    %51 = vector.shape_cast %50 : vector<4x2x128xf32> to vector<8x128xf32>
    %c0_59 = arith.constant 0 : index
    %c1_60 = arith.constant 1 : index
    %c0_61 = arith.constant 0 : index
    %52 = vector.load %arg8[%c0_59, %c1_60, %c0_61] : memref<4x3x128xf32, #tpu.memory_space<vmem>>, vector<4x2x128xf32>
    %53 = vector.shape_cast %52 : vector<4x2x128xf32> to vector<8x128xf32>
    %cst_62 = arith.constant dense<0.000000e+00> : vector<8x64xf32>
    %54 = tpu.matmul %51, %47, %cst_62 {dimension_numbers = #tpu.dot_dimension_numbers<[1], [0], [0], [1], [0, 0, 1, 1], [], []>} : vector<8x128xf32>, vector<128x64xf32>, vector<8x64xf32> -> vector<8x64xf32>
    %cst_63 = arith.constant dense<0.000000e+00> : vector<8x64xf32>
    %55 = tpu.matmul %53, %49, %cst_63 {dimension_numbers = #tpu.dot_dimension_numbers<[1], [0], [0], [1], [0, 0, 1, 1], [], []>} : vector<8x128xf32>, vector<128x64xf32>, vector<8x64xf32> -> vector<8x64xf32>
    %56 = arith.addf %54, %55 : vector<8x64xf32>
    %cst_64 = arith.constant 0.000000e+00 : f32
    %57 = vector.broadcast %cst_64 : f32 to vector<8x64xf32>
    %58 = arith.maximumf %56, %57 : vector<8x64xf32>
    %59 = vector.shape_cast %58 : vector<8x64xf32> to vector<4x1x2x64xf32>
    %60 = vector.extract_strided_slice %59 {offsets = [0, 0, 0, 0], sizes = [4, 1, 1, 64], strides = [1, 1, 1, 1]} : vector<4x1x2x64xf32> to vector<4x1x1x64xf32>
    %61 = vector.shape_cast %60 : vector<4x1x1x64xf32> to vector<4x1x64xf32>
    %c0_65 = arith.constant 0 : index
    %c0_66 = arith.constant 0 : index
    %c64_67 = arith.constant 64 : index
    %62 = vector.load %arg9[%c0_65, %c0_66, %c64_67] : memref<4x2x128xf32, #tpu.memory_space<vmem>>, vector<4x1x64xf32>
    tpu.vector_store %arg9[%c0_65, %c0_66, %c64_67], %61 {strides = array<i32>} : memref<4x2x128xf32, #tpu.memory_space<vmem>>, vector<4x1x64xf32>,
    %63 = vector.extract_strided_slice %59 {offsets = [0, 0, 1, 0], sizes = [4, 1, 1, 64], strides = [1, 1, 1, 1]} : vector<4x1x2x64xf32> to vector<4x1x1x64xf32>
    %64 = vector.shape_cast %63 : vector<4x1x1x64xf32> to vector<4x1x64xf32>
    %c0_68 = arith.constant 0 : index
    %c1_69 = arith.constant 1 : index
    %c0_70 = arith.constant 0 : index
    %65 = vector.load %arg9[%c0_68, %c1_69, %c0_70] : memref<4x2x128xf32, #tpu.memory_space<vmem>>, vector<4x1x64xf32>
    tpu.vector_store %arg9[%c0_68, %c1_69, %c0_70], %64 {strides = array<i32>} : memref<4x2x128xf32, #tpu.memory_space<vmem>>, vector<4x1x64xf32>,
    %cst_71 = arith.constant 0.000000e+00 : f32
    %66 = vector.broadcast %cst_71 : f32 to vector<4x1x64xf32>
    %c0_72 = arith.constant 0 : index
    %c0_73 = arith.constant 0 : index
    %c0_74 = arith.constant 0 : index
    %67 = vector.load %arg9[%c0_72, %c0_73, %c0_74] : memref<4x2x128xf32, #tpu.memory_space<vmem>>, vector<4x1x64xf32>
    tpu.vector_store %arg9[%c0_72, %c0_73, %c0_74], %66 {strides = array<i32>} : memref<4x2x128xf32, #tpu.memory_space<vmem>>, vector<4x1x64xf32>,
    %c0_75 = arith.constant 0 : index
    %c1_76 = arith.constant 1 : index
    %c64_77 = arith.constant 64 : index
    %68 = vector.load %arg9[%c0_75, %c1_76, %c64_77] : memref<4x2x128xf32, #tpu.memory_space<vmem>>, vector<4x1x64xf32>
    tpu.vector_store %arg9[%c0_75, %c1_76, %c64_77], %66 {strides = array<i32>} : memref<4x2x128xf32, #tpu.memory_space<vmem>>, vector<4x1x64xf32>,
    %c0_78 = arith.constant 0 : index
    %c0_79 = arith.constant 0 : index
    %c0_80 = arith.constant 0 : index
    %69 = vector.load %arg9[%c0_78, %c0_79, %c0_80] : memref<4x2x128xf32, #tpu.memory_space<vmem>>, vector<4x1x128xf32>
    %c0_81 = arith.constant 0 : index
    %c1_82 = arith.constant 1 : index
    %c0_83 = arith.constant 0 : index
    %70 = vector.load %arg9[%c0_81, %c1_82, %c0_83] : memref<4x2x128xf32, #tpu.memory_space<vmem>>, vector<4x1x128xf32>
    %c0_84 = arith.constant 0 : index
    %c0_85 = arith.constant 0 : index
    %c0_86 = arith.constant 0 : index
    %71 = vector.load %arg5[%c0_84, %c0_85, %c0_86] : memref<2x1x128xf32, #tpu.memory_space<vmem>>, vector<1x1x128xf32>
    %72 = vector.shape_cast %71 : vector<1x1x128xf32> to vector<1x128xf32>
    %73 = vector.shape_cast %72 : vector<1x128xf32> to vector<1x1x128xf32>
    %74 = vector.broadcast %73 : vector<1x1x128xf32> to vector<4x1x128xf32>
    %75 = arith.mulf %69, %74 : vector<4x1x128xf32>
    %c1_87 = arith.constant 1 : index
    %c0_88 = arith.constant 0 : index
    %c0_89 = arith.constant 0 : index
    %76 = vector.load %arg5[%c1_87, %c0_88, %c0_89] : memref<2x1x128xf32, #tpu.memory_space<vmem>>, vector<1x1x128xf32>
    %77 = vector.shape_cast %76 : vector<1x1x128xf32> to vector<1x128xf32>
    %78 = vector.shape_cast %77 : vector<1x128xf32> to vector<1x1x128xf32>
    %79 = vector.broadcast %78 : vector<1x1x128xf32> to vector<4x1x128xf32>
    %80 = arith.mulf %70, %79 : vector<4x1x128xf32>
    %81 = arith.addf %75, %80 : vector<4x1x128xf32>
    %cst_90 = arith.constant dense<0.000000e+00> : vector<4x1xf32>
    %82 = vector.multi_reduction <add>, %81, %cst_90 [2] : vector<4x1x128xf32> to vector<4x1xf32>
    %83 = vector.shape_cast %82 : vector<4x1xf32> to vector<4x1x1xf32>
    %cst_91 = arith.constant 0.000000e+00 : f32
    %84 = vector.broadcast %cst_91 : f32 to vector<4x1x1xf32>
    %85 = arith.subf %84, %83 : vector<4x1x1xf32>
    %86 = math.exp %85 : vector<4x1x1xf32>
    %cst_92 = arith.constant 1.000000e+00 : f32
    %87 = vector.broadcast %cst_92 : f32 to vector<4x1x1xf32>
    %88 = arith.addf %87, %86 : vector<4x1x1xf32>
    %89 = tpu.reciprocal %88 {approx = true} : vector<4x1x1xf32> -> vector<4x1x1xf32>
    %c0_93 = arith.constant 0 : index
    %c0_94 = arith.constant 0 : index
    %c0_95 = arith.constant 0 : index
    %90 = vector.load %arg6[%c0_93, %c0_94, %c0_95] : memref<4x1x1xf32, #tpu.memory_space<vmem>>, vector<4x1x1xf32>
    tpu.vector_store %arg6[%c0_93, %c0_94, %c0_95], %89 {strides = array<i32>} : memref<4x1x1xf32, #tpu.memory_space<vmem>>, vector<4x1x1xf32>,
    return
  }
  func.func @transform_0(%arg0: i32) -> (i32, i32, i32) {
    %c0_i32 = arith.constant 0 : i32
    %c0_i32_0 = arith.constant 0 : i32
    %c0_i32_1 = arith.constant 0 : i32
    return %arg0, %c0_i32, %c0_i32_0 : i32, i32, i32
  }
  func.func @transform_1(%arg0: i32) -> (i32, i32, i32) {
    %c0_i32 = arith.constant 0 : i32
    %c0_i32_0 = arith.constant 0 : i32
    %c0_i32_1 = arith.constant 0 : i32
    %c0_i32_2 = arith.constant 0 : i32
    return %c0_i32, %c0_i32_0, %c0_i32_1 : i32, i32, i32
  }
  func.func @transform_2(%arg0: i32) -> (i32, i32, i32) {
    %c0_i32 = arith.constant 0 : i32
    %c0_i32_0 = arith.constant 0 : i32
    %c0_i32_1 = arith.constant 0 : i32
    %c0_i32_2 = arith.constant 0 : i32
    return %c0_i32, %c0_i32_0, %c0_i32_1 : i32, i32, i32
  }
  func.func @transform_3(%arg0: i32) -> (i32, i32, i32) {
    %c0_i32 = arith.constant 0 : i32
    %c0_i32_0 = arith.constant 0 : i32
    %c0_i32_1 = arith.constant 0 : i32
    %c0_i32_2 = arith.constant 0 : i32
    return %c0_i32, %c0_i32_0, %c0_i32_1 : i32, i32, i32
  }
  func.func @transform_4(%arg0: i32) -> (i32, i32, i32) {
    %c0_i32 = arith.constant 0 : i32
    %c0_i32_0 = arith.constant 0 : i32
    %c0_i32_1 = arith.constant 0 : i32
    %c0_i32_2 = arith.constant 0 : i32
    return %c0_i32, %c0_i32_0, %c0_i32_1 : i32, i32, i32
  }
  func.func @transform_5(%arg0: i32) -> (i32, i32, i32) {
    %c0_i32 = arith.constant 0 : i32
    %c0_i32_0 = arith.constant 0 : i32
    %c0_i32_1 = arith.constant 0 : i32
    return %arg0, %c0_i32, %c0_i32_0 : i32, i32, i32
  }
}

</mosaic_0001>

<bundles_post_ra>
// kernel: discriminator_forward.1
= control target key start
LH: loop header
LB: loop body
LE: loop exit
PB: predicated region body
PF: predicated region fallthrough
CT: control target
= control target key end

     0   :  { %s1995_s18 = smov 0   ;;  %s2507_s0 = inlined_call_operand.vmem [shape: f32[8,9,32], index: 0, kind: input, shape index: {}]   ;;  %s2508_s1 = inlined_call_operand.vmem [shape: f32[2,32,64], index: 1, kind: input, shape index: {}]   ;;  %s2509_s2 = inlined_call_operand.vmem [shape: f32[2,128,64], index: 2, kind: input, shape index: {}]   ;;  %s2510_s3 = inlined_call_operand.vmem [shape: f32[2,128,64], index: 3, kind: input, shape index: {}]   ;;  %s2511_s4 = inlined_call_operand.vmem [shape: f32[2,1,128], index: 4, kind: input, shape index: {}]   ;;  %s2512_s5 = inlined_call_operand.vmem [shape: f32[8,1,1], index: 5, kind: output, shape index: {}]  }
   0x1 LB: > { %s1464_s19 = sadd.s32 4294967295, %s1958_s18   ;;  %p1468_p0 = scmp.ge.s32.totalorder %s1958_s18, 1  ;;  %s1958_s18 = sphi %s1995_s18, %s15_s18  }
   0x2   : > { %p189_p1 = scmp.lt.s32.totalorder %s1958_s18, 3 }
   0x4   : > { %p190_p2 = pnand %p1468_p0, %p189_p1 }
   0x5   : > { %v1473_v0 = vld [vmem:[%s2508_s1 + $0x20] sm:$0xff] (!%p190_p2)  ;;  %v1474_v1 = vld [vmem:[%s2508_s1 + $0x28] sm:$0xff] (!%p190_p2)  ;;  %s1469_s26 = sshll.u32 (!%p190_p2), %s1464_s19, 2  ;;  %v1475_v5 = vld [vmem:[%s2508_s1 + $0x30] sm:$0xff] (!%p190_p2)  ;;  %vm246_vm0 = vcmask (!%p190_p2), 261120   ;;  %v453_v34 = vlaneseq (!%p190_p2)  ;;  %vm581_vm1 = vcmask (!%p190_p2), 1041409  }
   0x6   : > { %193 = sbr.rel (%p190_p2) target bundleno = 1330 (0x532), region = 40  ;;  %v229_v2 = vld [vmem:[%s2508_s1] sm:$0xff] (!%p190_p2)  ;;  %v1775_v3 = vpack.c.bf16 (!%p190_p2), %v1474_v1, %v1473_v0  ;;  %v230_v4 = vld [vmem:[%s2508_s1 + $0x8] sm:$0xff] (!%p190_p2)  ;;  %v1476_v6 = vld [vmem:[%s2508_s1 + $0x38] sm:$0xff] (!%p190_p2)  ;;  %p218_p3 = scmp.lt.s32.totalorder (!%p190_p2), %s1469_s26, 7  ;;  %vm583_vm2 = vcmask (!%p190_p2), 1042434  }
   0x7   : > { %v1783_v7 = vpack.c.bf16 (!%p190_p2), %v230_v4, %v229_v2  ;;  %v1779_v8 = vpack.c.bf16 (!%p190_p2), %v1476_v6, %v1475_v5  ;;  %v231_v9 = vld [vmem:[%s2508_s1 + $0x10] sm:$0xff] (!%p190_p2)  ;;  %v232_v10 = vld [vmem:[%s2508_s1 + $0x18] sm:$0xff] (!%p190_p2)  ;;  %v1485_v20 = vld [vmem:[%s2509_s2 + $0x80] sm:$0xff] (!%p190_p2)  ;;  %v1960_v32 = vmov (!%p190_p2), 1983009808   ;;  %v454_v36 = vshrl.u32 (!%p190_p2), %v453_v34, 7 }
   0x8   : > { %1776 = vmatprep.subr.bf16.mxu1 (!%p190_p2), %v1775_v3  ;;  %v1787_v11 = vpack.c.bf16 (!%p190_p2), %v232_v10, %v231_v9  ;;  %v1486_v21 = vld [vmem:[%s2509_s2 + $0x88] sm:$0xff] (!%p190_p2)  ;;  %v1487_v22 = vld [vmem:[%s2509_s2 + $0x90] sm:$0xff] (!%p190_p2)  ;;  %v1488_v24 = vld [vmem:[%s2509_s2 + $0x98] sm:$0xff] (!%p190_p2)  ;;  %v451_v33 = vunpack.c.l.s4 (!%p190_p2), %v1960_v32  ;;  %vm585_vm3 = vcmask (!%p190_p2), 1043459   ;;  %vm679_vm4 = vcmask (!%p190_p2), 1044484   ;;  %s1961_s9 = smov (!%p190_p2), 64  }
   0x9   : > { %1784 = vmatprep.subr.bf16.mxu0 (!%p190_p2), %v1783_v7  ;;  %1778 = vmatpush3.bf16.msra.mxu1 (!%p190_p2), %v1775_v3  ;;  %v1791_v23 = vpack.c.bf16 (!%p190_p2), %v1486_v21, %v1485_v20  ;;  %v1795_v25 = vpack.c.bf16 (!%p190_p2), %v1488_v24, %v1487_v22  ;;  %v1489_v26 = vld [vmem:[%s2509_s2 + $0xa0] sm:$0xff] (!%p190_p2)  ;;  %v1490_v27 = vld [vmem:[%s2509_s2 + $0xa8] sm:$0xff] (!%p190_p2)  ;;  %v1491_v29 = vld [vmem:[%s2509_s2 + $0xb0] sm:$0xff] (!%p190_p2)  ;;  %v2067_v45 = vsub.s32 (!%p190_p2), 0, %v454_v36  ;;  %v2069_v47 = vsub.s32 (!%p190_p2), 1, %v454_v36 }
   0xa   : > { %1786 = vmatpush3.bf16.msra.mxu0 (!%p190_p2), %v1783_v7  ;;  %1780 = vmatprep.subr.bf16.mxu1 (!%p190_p2), %v1779_v8  ;;  %v1799_v28 = vpack.c.bf16 (!%p190_p2), %v1490_v27, %v1489_v26  ;;  %v1492_v30 = vld [vmem:[%s2509_s2 + $0xb8] sm:$0xff] (!%p190_p2)  ;;  %v452_v35 = vunpack.c.0.s8 (!%p190_p2), %v451_v33  ;;  %vm608_vm5 = vcmask (!%p190_p2), 1043968   ;;  %vm694_vm6 = vcmask (!%p190_p2), 520193  }
   0xb   : > { %1788 = vmatprep.subr.bf16.mxu0 (!%p190_p2), %v1787_v11  ;;  %v1803_v31 = vpack.c.bf16 (!%p190_p2), %v1492_v30, %v1491_v29  ;;  %vm699_vm7 = vcmask (!%p190_p2), 516096   ;;  %vm704_vm8 = vcmask (!%p190_p2), 1040896   ;;  %vm1964_vm9 = vmmov (!%p190_p2), 0  }
   0xc   : > { %v2065_v41 = vsub.s32 (!%p190_p2), %v452_v35, %v454_v36  ;;  %vm1002_vm10 = vcmask (!%p190_p2), 1041920   ;;  %vm1047_vm11 = vcmask (!%p190_p2), 518145   ;;  %vm1340_vm12 = vcmask (!%p190_p2), 517121  }
   0xd   : > { %s2514_s26 = smov (!%p218_p3, %s1469_s26), 7  ;;  %1782 = vmatpush3.bf16.msra.mxu1 %v1779_v8  ;;  %vm1376_vm13 = vcmask 1040384   ;;  %vm1409_vm14 = vcmask 0  }
   0xe   : > { %s1520_s12 = sshll.u32 %s2514_s26, 4  ;;  %1790 = vmatpush3.bf16.msra.mxu0 %v1787_v11  ;;  %1792 = vmatprep.subr.bf16.mxu1 %v1791_v23  ;;  %s227_s17 = scalar_lea.vmem %s2512_s5, %s2514_s26 }
   0xf   : > { %s222_s15 = scalar_lea.vmem %s2507_s0, %s1520_s12 }
  0x10   : > { %v242_v12 = vld [vmem:[%s222_s15 + $0x1] sm:$0xff]  ;;  %v243_v14 = vld [vmem:[%s222_s15 + $0x11] sm:$0xff] }
  0x11   : > { %v238_v13 = vld [vmem:[%s222_s15] sm:$0xff]  ;;  %1615 = vmatprep.mubr.msk.f32.mxu1 %vm246_vm0, %v242_v12  ;;  %v239_v15 = vld [vmem:[%s222_s15 + $0x10] sm:$0xff] }
  0x12   : > { %1629 = vmatprep.mubr.msk.f32.mxu0 %vm246_vm0, %v238_v13  ;;  %v244_v16 = vld [vmem:[%s222_s15 + $0x21] sm:$0xff]  ;;  %1616 = vmatmul.mubr.msk.f32.vlgmr.msra.gmra.mrb[0].mxu1 %vm246_vm0, %v243_v14  ;;  %v245_v18 = vld [vmem:[%s222_s15 + $0x31] sm:$0xff] }
  0x13   : > { %v240_v17 = vld [vmem:[%s222_s15 + $0x20] sm:$0xff]  ;;  %1630 = vmatmul.mubr.msk.f32.vlgmr.msra.gmra.mrb[0].mxu0 %vm246_vm0, %v239_v15  ;;  %1618 = vmatprep.mubr.msk.f32.mxu1 %vm246_vm0, %v244_v16  ;;  %v241_v19 = vld [vmem:[%s222_s15 + $0x30] sm:$0xff] }
  0x14   : > { %1632 = vmatprep.mubr.msk.f32.mxu0 %vm246_vm0, %v240_v17  ;;  %1794 = vmatpush3.bf16.msra.mxu1 %v1791_v23 }
  0x15   : > { %1796 = vmatprep.subr.bf16.mxu1 %v1795_v25 }
  0x16   : > { %1619 = vmatmul.mubr.msk.f32.gmra.mrb[2].mxu1 %vm246_vm0, %v245_v18 }
  0x17   : > { %1633 = vmatmul.mubr.msk.f32.gmra.mrb[2].mxu0 %vm246_vm0, %v241_v19 }
  0x18   : > { %1798 = vmatpush3.bf16.msra.mxu1 %v1795_v25 }
  0x19   : > { %1800 = vmatprep.subr.bf16.mxu1 %v1799_v28 }
  0x1c   : > { %1802 = vmatpush3.bf16.msra.mxu1 %v1799_v28 }
  0x1d   : > { %1804 = vmatprep.subr.bf16.mxu1 %v1803_v31 }
  0x20   : > { %1806 = vmatpush3.bf16.msra.mxu1 %v1803_v31 }
  0xe5   : > { %v1617_v37 = vpop.f32.mrb[0].mxu1 }
  0xe6   : > { %v1631_v38 = vpop.f32.mrb[0].mxu0  ;;  %v325_v39 = vpop.f32.mrb[1].mxu1 }
  0xe7   : > { %v428_v40 = vadd.f32 %v1631_v38, %v1617_v37  ;;  %v422_v42 = vpop.f32.mrb[1].mxu0 }
  0xe8   : > { %v423_v43 = vadd.f32 %v422_v42, %v325_v39 }
  0xe9   : > { %v442_v44 = vmax.f32 %v428_v40, 0.0  ;;  %v1620_v46 = vpop.f32.mrb[2].mxu1 }
  0xea   : > { %v441_v48 = vmax.f32 %v423_v43, 0.0  ;;  %v1634_v49 = vpop.f32.mrb[2].mxu0  ;;  %v335_v50 = vpop.f32.mrb[3].mxu1 }
  0xeb   : > { %v466_v51 = vcombine.high %v442_v44, %v442_v44  ;;  %v2072_v52 = vrot.slane %v442_v44, %v2065_v41  ;;  %v438_v53 = vadd.f32 %v1634_v49, %v1620_v46  ;;  %v432_v54 = vpop.f32.mrb[3].mxu0  ;;  %v1494_v49 = vld [vmem:[%s2509_s2 + $0xc8] sm:$0xff] }
  0xec   : > { %v449_v55 = vcombine.high %v441_v48, %v441_v48  ;;  %v2075_v56 = vrot.slane %v441_v48, %v2065_v41  ;;  %v433_v57 = vadd.f32 %v432_v54, %v335_v50  ;;  %v1493_v48 = vld [vmem:[%s2509_s2 + $0xc0] sm:$0xff] }
  0xed   : > { %v2078_v58 = vrot.slane %v466_v51, %v2065_v41  ;;  %v2082_v59 = vcombine.high %v2072_v52, %v2072_v52  ;;  %v536_v60 = vrot.slane %v2072_v52, %v2067_v45  ;;  %v632_v61 = vrot.slane %v2072_v52, %v2069_v47 }
  0xee   : > { %v2089_v62 = vrot.slane %v449_v55, %v2065_v41  ;;  %v464_v63 = vcombine.high %v2075_v56, %v2075_v56  ;;  %v520_v0 = vrot.slane %v2075_v56, %v2067_v45  ;;  %v616_v3 = vrot.slane %v2075_v56, %v2069_v47 }
  0xef   : > { %v540_v1 = vrot.slane %v2082_v59, %v2067_v45  ;;  %v636_v2 = vrot.slane %v2082_v59, %v2069_v47  ;;  %v444_v4 = vmax.f32 %v438_v53, 0.0  ;;  %v640_v5 = vrot.slane %v2078_v58, %v2069_v47 }
  0xf0   : > { %v620_v6 = vrot.slane %v464_v63, %v2069_v47  ;;  %v443_v7 = vmax.f32 %v433_v57, 0.0  ;;  %v465_v8 = vcombine.high %v2089_v62, %v2089_v62  ;;  %v624_v9 = vrot.slane %v2089_v62, %v2069_v47 }
  0xf1   : > { %v500_v10 = vcombine.high %v444_v4, %v444_v4  ;;  %v2109_v11 = vrot.slane %v444_v4, %v2065_v41  ;;  %v524_v12 = vrot.slane %v464_v63, %v2067_v45  ;;  %v528_v15 = vrot.slane %v2089_v62, %v2067_v45  ;;  %v1495_v62 = vld [vmem:[%s2509_s2 + $0xd0] sm:$0xff]  ;;  %v1496_v63 = vld [vmem:[%s2509_s2 + $0xd8] sm:$0xff] }
  0xf2   : > { %v483_v13 = vcombine.high %v443_v7, %v443_v7  ;;  %v490_v14 = vrot.slane %v443_v7, %v2065_v41  ;;  %v532_v16 = vrot.slane %v465_v8, %v2067_v45  ;;  %v628_v20 = vrot.slane %v465_v8, %v2069_v47 }
  0xf3   : > { %v2117_v17 = vrot.slane %v500_v10, %v2065_v41  ;;  %v515_v18 = vcombine.high %v2109_v11, %v2109_v11  ;;  %v568_v19 = vrot.slane %v2109_v11, %v2067_v45  ;;  %v582_v28 = vsel %vm581_vm1, %v524_v12, %v520_v0  ;;  %v1497_v10 = vld [vmem:[%s2509_s2 + $0xe0] sm:$0xff] }
  0xf4   : > { %v497_v21 = vrot.slane %v483_v13, %v2065_v41  ;;  %v498_v22 = vcombine.high %v490_v14, %v490_v14  ;;  %v552_v23 = vrot.slane %v490_v14, %v2067_v45  ;;  %v648_v24 = vrot.slane %v490_v14, %v2069_v47 }
  0xf5   : > { %v572_v25 = vrot.slane %v515_v18, %v2067_v45  ;;  %v668_v26 = vrot.slane %v515_v18, %v2069_v47  ;;  %v672_v27 = vrot.slane %v2117_v17, %v2069_v47  ;;  %v584_v31 = vsel %vm583_vm2, %v528_v15, %v582_v28  ;;  %v1499_v18 = vld [vmem:[%s2509_s2 + $0xf0] sm:$0xff] }
  0xf6   : > { %v652_v29 = vrot.slane %v498_v22, %v2069_v47  ;;  %v656_v30 = vrot.slane %v497_v21, %v2069_v47  ;;  %v499_v32 = vcombine.high %v497_v21, %v497_v21  ;;  %v586_v33 = vsel %vm585_vm3, %v532_v16, %v584_v31  ;;  %v711_v28 = vld [vmem:[%s2509_s2 + $0x10] sm:$0xff] }
  0xf7   : > { %v556_v34 = vrot.slane %v498_v22, %v2067_v45  ;;  %v560_v35 = vrot.slane %v497_v21, %v2067_v45  ;;  %v482_v36 = vcombine.high %v2078_v58, %v2078_v58  ;;  %596 = vrot.lane.b32.xlu0 %v586_v33, %s1961_s9  ;;  %v544_v39 = vrot.slane %v2078_v58, %v2067_v45  ;;  %v1500_v58 = vld [vmem:[%s2509_s2 + $0xf8] sm:$0xff]  ;;  %v713_v33 = vld [vmem:[%s2509_s2 + $0x20] sm:$0xff] }
  0xf8   : > { %v564_v37 = vrot.slane %v499_v32, %v2067_v45  ;;  %v660_v38 = vrot.slane %v499_v32, %v2069_v47  ;;  %v587_v40 = vsel %vm581_vm1, %v540_v1, %v536_v60  ;;  %v516_v44 = vcombine.high %v2117_v17, %v2117_v17 }
  0xf9   : > { %v590_v42 = vsel %vm581_vm1, %v556_v34, %v552_v23  ;;  %v548_v43 = vrot.slane %v482_v36, %v2067_v45  ;;  %v576_v46 = vrot.slane %v2117_v17, %v2067_v45  ;;  %v588_v51 = vsel %vm583_vm2, %v544_v39, %v587_v40  ;;  %v714_v34 = vld [vmem:[%s2509_s2 + $0x28] sm:$0xff]  ;;  %v717_v39 = vld [vmem:[%s2509_s2 + $0x40] sm:$0xff] }
  0xfa   : > { %v591_v50 = vsel %vm583_vm2, %v560_v35, %v590_v42  ;;  %v593_v53 = vsel %vm581_vm1, %v572_v25, %v568_v19  ;;  %v677_v54 = vsel %vm583_vm2, %v620_v6, %v616_v3  ;;  %v580_v57 = vrot.slane %v516_v44, %v2067_v45  ;;  %v709_v19 = vld [vmem:[%s2509_s2] sm:$0xff]  ;;  %v718_v40 = vld [vmem:[%s2509_s2 + $0x48] sm:$0xff] }
  0xfb   : > { %v592_v55 = vsel %vm585_vm3, %v564_v37, %v591_v50  ;;  %v589_v56 = vsel %vm585_vm3, %v548_v43, %v588_v51  ;;  %v594_v60 = vsel %vm583_vm2, %v576_v46, %v593_v53  ;;  %v678_v0 = vsel %vm585_vm3, %v624_v9, %v677_v54  ;;  %v1498_v9 = vld [vmem:[%s2509_s2 + $0xe8] sm:$0xff]  ;;  %v716_v37 = vld [vmem:[%s2509_s2 + $0x38] sm:$0xff]  ;;  %v719_v43 = vld [vmem:[%s2509_s2 + $0x50] sm:$0xff] }
  0xfc   : > { %600 = vrot.lane.b32.xlu1 %v592_v55, %s1961_s9  ;;  %598 = vrot.lane.b32.xlu0 %v589_v56, %s1961_s9  ;;  %v1807_v1 = vpack.c.bf16 %v1494_v49, %v1493_v48  ;;  %v684_v3 = vsel %vm583_vm2, %v652_v29, %v648_v24  ;;  %v664_v4 = vrot.slane %v2109_v11, %v2069_v47  ;;  %v1962_v23 = vmov 0.0   ;;  %v712_v29 = vld [vmem:[%s2509_s2 + $0x18] sm:$0xff]  ;;  %v721_v48 = vld [vmem:[%s2509_s2 + $0x60] sm:$0xff] }
  0xfd   : > { %v680_v6 = vsel %vm679_vm4, %v628_v20, %v678_v0  ;;  %v685_v7 = vsel %vm585_vm3, %v656_v30, %v684_v3  ;;  %v644_v8 = vrot.slane %v482_v36, %v2069_v47  ;;  %v681_v11 = vsel %vm583_vm2, %v636_v2, %v632_v61  ;;  %v710_v20 = vld [vmem:[%s2509_s2 + $0x8] sm:$0xff]  ;;  %v715_v36 = vld [vmem:[%s2509_s2 + $0x30] sm:$0xff]  ;;  %v724_v53 = vld [vmem:[%s2509_s2 + $0x78] sm:$0xff]  ;;  %1737 = vmatprep.mubr.msk.f32.mxu0 %vm1964_vm9, %v1962_v23 }
  0xfe   : > { %1808 = vmatprep.subr.bf16.mxu1 %v1807_v1  ;;  %v686_v12 = vsel %vm679_vm4, %v660_v38, %v685_v7  ;;  %v1811_v13 = vpack.c.bf16 %v1496_v63, %v1495_v62  ;;  %v676_v14 = vrot.slane %v516_v44, %v2069_v47  ;;  %v595_v15 = vsel %vm585_vm3, %v580_v57, %v594_v60  ;;  %v720_v44 = vld [vmem:[%s2509_s2 + $0x58] sm:$0xff]  ;;  %v722_v49 = vld [vmem:[%s2509_s2 + $0x68] sm:$0xff]  ;;  %v723_v51 = vld [vmem:[%s2509_s2 + $0x70] sm:$0xff] }
  0xff   : > { %v682_v16 = vsel %vm585_vm3, %v640_v5, %v681_v11  ;;  %1810 = vmatpush3.bf16.msra.mxu1 %v1807_v1  ;;  %v687_v17 = vsel %vm583_vm2, %v668_v26, %v664_v4  ;;  %v1815_v61 = vpack.c.bf16 %v1498_v9, %v1497_v10  ;;  %v1819_v5 = vpack.c.bf16 %v1500_v58, %v1499_v18  ;;  %v1501_v56 = vld [vmem:[%s2510_s3 + $0x80] sm:$0xff]  ;;  %v1502_v57 = vld [vmem:[%s2510_s3 + $0x88] sm:$0xff]  ;;  %v1503_v60 = vld [vmem:[%s2510_s3 + $0x90] sm:$0xff] }
 0x100   : > { %602 = vrot.lane.b32.xlu1 %v595_v15, %s1961_s9  ;;  %v683_v52 = vsel %vm679_vm4, %v644_v8, %v682_v16  ;;  %1812 = vmatprep.subr.bf16.mxu1 %v1811_v13  ;;  %v688_v59 = vsel %vm585_vm3, %v672_v27, %v687_v17  ;;  %v1823_v21 = vpack.c.bf16 %v710_v20, %v709_v19  ;;  %v1963_v62 = vmov 0.0|0.0   ;;  %v1504_v0 = vld [vmem:[%s2510_s3 + $0x98] sm:$0xff]  ;;  %v1505_v3 = vld [vmem:[%s2510_s3 + $0xa0] sm:$0xff]  ;;  %v1506_v4 = vld [vmem:[%s2510_s3 + $0xa8] sm:$0xff] }
 0x101   : > { %v689_v2 = vsel %vm679_vm4, %v676_v14, %v688_v59  ;;  %v1827_v31 = vpack.c.bf16 %v712_v29, %v711_v28  ;;  %v1831_v35 = vpack.c.bf16 %v714_v34, %v713_v33  ;;  %v1835_v38 = vpack.c.bf16 %v716_v37, %v715_v36  ;;  %1855 = vmatprep.subr.bf16.mxu0 %v1963_v62  ;;  %v1508_v11 = vld [vmem:[%s2510_s3 + $0xb8] sm:$0xff]  ;;  %v1511_v34 = vld [vmem:[%s2510_s3 + $0xd0] sm:$0xff] }
 0x102   : > { %v1839_v42 = vpack.c.bf16 %v718_v40, %v717_v39  ;;  %v1843_v46 = vpack.c.bf16 %v720_v44, %v719_v43  ;;  %v1847_v50 = vpack.c.bf16 %v722_v49, %v721_v48  ;;  %v1851_v54 = vpack.c.bf16 %v724_v53, %v723_v51  ;;  %v1514_v51 = vld [vmem:[%s2510_s3 + $0xe8] sm:$0xff] }
 0x103   : > { %1814 = vmatpush3.bf16.msra.mxu1 %v1811_v13  ;;  %v1856_v63 = vpack.c.bf16 %v1502_v57, %v1501_v56  ;;  %v1859_v1 = vpack.c.bf16 %v1504_v0, %v1503_v60  ;;  %v1516_v56 = vld [vmem:[%s2510_s3 + $0xf8] sm:$0xff] }
 0x104   : > { %1816 = vmatprep.subr.bf16.mxu1 %v1815_v61 }
 0x105   : > { %1857 = vmatpush3.bf16.msra.mxu0 %v1856_v63 }
 0x106   : > { %1858 = vmatprep.subr.bf16.mxu0 %v1963_v62 }
 0x107   : > { %1818 = vmatpush3.bf16.msra.mxu1 %v1815_v61 }
 0x108   : > { %1820 = vmatprep.subr.bf16.mxu1 %v1819_v5 }
 0x109   : > { %1860 = vmatpush3.bf16.msra.mxu0 %v1859_v1 }
 0x10a   : > { %1861 = vmatprep.subr.bf16.mxu0 %v1963_v62 }
 0x10b   : > { %1822 = vmatpush3.bf16.msra.mxu1 %v1819_v5 }
 0x10c   : > { %1824 = vmatprep.subr.bf16.mxu1 %v1823_v21 }
 0x169   : > { %v597_v22 = vpop.permute.xlu0 %596 }
 0x16a   : > { %609 = vst.msk [vmem:[#allocation2] sm:$0xf] %vm608_vm5, %v597_v22 }
 0x16b   : > { %695 = vst.msk [vmem:[#allocation2] sm:$0x1e] %vm694_vm6, %v680_v6  ;;  %v1862_v6 = vpack.c.bf16 %v1506_v4, %v1505_v3  ;;  %v1060_v4 = vld [vmem:[%s2510_s3] sm:$0xff] }
 0x16c   : > { %700 = vst.msk [vmem:[#allocation2] sm:$0x1] %vm699_vm7, %v1962_v23 }
 0x16d   : > { %705 = vst.msk [vmem:[#allocation2 + $0x4] sm:$0x1] %vm704_vm8, %v1962_v23  ;;  %1863 = vmatpush3.bf16.msra.mxu0 %v1862_v6 }
 0x16e   : > { %v601_v24 = vpop.permute.xlu1 %600  ;;  %v599_v25 = vpop.permute.xlu0 %598  ;;  %1864 = vmatprep.subr.bf16.mxu0 %v1963_v62 }
 0x16f   : > { %611 = vst.msk [vmem:[#allocation2 + $0x10] sm:$0xf] %vm608_vm5, %v601_v24  ;;  %610 = vst.msk [vmem:[#allocation2 + $0x8] sm:$0xf] %vm608_vm5, %v599_v25  ;;  %v1509_v24 = vld [vmem:[%s2510_s3 + $0xc0] sm:$0xff]  ;;  %v1510_v25 = vld [vmem:[%s2510_s3 + $0xc8] sm:$0xff] }
 0x170   : > { %697 = vst.msk [vmem:[#allocation2 + $0x10] sm:$0x1e] %vm694_vm6, %v686_v12  ;;  %696 = vst.msk [vmem:[#allocation2 + $0x8] sm:$0x1e] %vm694_vm6, %v683_v52  ;;  %v1507_v12 = vld [vmem:[%s2510_s3 + $0xb0] sm:$0xff]  ;;  %v1868_v39 = vpack.c.bf16 %v1510_v25, %v1509_v24  ;;  %v1075_v24 = vld [vmem:[%s2510_s3 + $0x78] sm:$0xff] }
 0x171   : > { %702 = vst.msk [vmem:[#allocation2 + $0x10] sm:$0x1] %vm699_vm7, %v1962_v23  ;;  %701 = vst.msk [vmem:[#allocation2 + $0x8] sm:$0x1] %vm699_vm7, %v1962_v23  ;;  %v1865_v15 = vpack.c.bf16 %v1508_v11, %v1507_v12  ;;  %v1063_v12 = vld [vmem:[%s2510_s3 + $0x18] sm:$0xff] }
 0x172   : > { %707 = vst.msk [vmem:[#allocation2 + $0x14] sm:$0x1] %vm704_vm8, %v1962_v23  ;;  %706 = vst.msk [vmem:[#allocation2 + $0xc] sm:$0x1] %vm704_vm8, %v1962_v23  ;;  %v603_v26 = vpop.permute.xlu1 %602 }
 0x173   : > { %612 = vst.msk [vmem:[#allocation2 + $0x18] sm:$0xf] %vm608_vm5, %v603_v26  ;;  %1866 = vmatpush3.bf16.msra.mxu0 %v1865_v15 }
 0x174   : > { %698 = vst.msk [vmem:[#allocation2 + $0x18] sm:$0x1e] %vm694_vm6, %v689_v2  ;;  %1867 = vmatprep.subr.bf16.mxu0 %v1963_v62 }
 0x175   : > { %703 = vst.msk [vmem:[#allocation2 + $0x18] sm:$0x1] %vm699_vm7, %v1962_v23 }
 0x176   : > { %708 = vst.msk [vmem:[#allocation2 + $0x1c] sm:$0x1] %vm704_vm8, %v1962_v23 }
 0x177   : > { %1869 = vmatpush3.bf16.msra.mxu0 %v1868_v39 }
 0x178   : > { %v1926_v32 = vld [vmem:[#allocation2] ss:$8 sps:$4 sm:$0xff]   ;;  %1870 = vmatprep.subr.bf16.mxu0 %v1963_v62 }
 0x179   : > { %v1924_v27 = vld [vmem:[#allocation2 + $0x1] ss:$8 sps:$4 sm:$0xff]  }
 0x17a   : > { %1667 = vmatprep.mubr.f32.mxu1 %v1924_v27 }
 0x17c   : > { %v1927_v55 = vld [vmem:[#allocation2 + $0x10] ss:$8 sps:$4 sm:$0xff]  }
 0x17d   : > { %v1925_v30 = vld [vmem:[#allocation2 + $0x11] ss:$8 sps:$4 sm:$0xff]  }
 0x17e   : > { %1668 = vmatmul.mubr.f32.vlgmr.msra.gmra.mrb[4].mxu1 %v1925_v30 }
 0x17f   : > { %1826 = vmatpush3.bf16.msra.mxu1 %v1823_v21  ;;  %1702 = vmatprep.mubr.f32.mxu1 %v1926_v32 }
 0x180   : > { %1828 = vmatprep.subr.bf16.mxu1 %v1827_v31 }
 0x183   : > { %1830 = vmatpush3.bf16.msra.mxu1 %v1827_v31 }
 0x184   : > { %1832 = vmatprep.subr.bf16.mxu1 %v1831_v35 }
 0x187   : > { %1834 = vmatpush3.bf16.msra.mxu1 %v1831_v35  ;;  %v1512_v35 = vld [vmem:[%s2510_s3 + $0xd8] sm:$0xff] }
 0x188   : > { %1836 = vmatprep.subr.bf16.mxu1 %v1835_v38  ;;  %v1871_v48 = vpack.c.bf16 %v1512_v35, %v1511_v34 }
 0x18a   : > { %1872 = vmatpush3.bf16.msra.mxu0 %v1871_v48 }
 0x18b   : > { %1838 = vmatpush3.bf16.msra.mxu1 %v1835_v38  ;;  %1873 = vmatprep.subr.bf16.mxu0 %v1963_v62 }
 0x18c   : > { %1840 = vmatprep.subr.bf16.mxu1 %v1839_v42 }
 0x18f   : > { %1842 = vmatpush3.bf16.msra.mxu1 %v1839_v42 }
 0x190   : > { %1844 = vmatprep.subr.bf16.mxu1 %v1843_v46 }
 0x193   : > { %1846 = vmatpush3.bf16.msra.mxu1 %v1843_v46 }
 0x194   : > { %1848 = vmatprep.subr.bf16.mxu1 %v1847_v50 }
 0x197   : > { %1850 = vmatpush3.bf16.msra.mxu1 %v1847_v50 }
 0x198   : > { %1852 = vmatprep.subr.bf16.mxu1 %v1851_v54 }
 0x19b   : > { %1854 = vmatpush3.bf16.msra.mxu1 %v1851_v54 }
 0x19e   : > { %1703 = vmatmul.mubr.f32.vlgmr.msra.gmra.mrb[4].mxu1 %v1927_v55  ;;  %v1515_v55 = vld [vmem:[%s2510_s3 + $0xf0] sm:$0xff] }
 0x19f   : > { %v1877_v57 = vpack.c.bf16 %v1516_v56, %v1515_v55 }
 0x271   : > { %v1704_v7 = vpop.f32.mrb[4].mxu1 }
 0x272   : > { %v917_v8 = vmax.f32 %v1704_v7, 0.0  ;;  %v907_v10 = vpop.f32.mrb[5].mxu1  ;;  %v1061_v7 = vld [vmem:[%s2510_s3 + $0x8] sm:$0xff] }
 0x273   : > { %v916_v9 = vmax.f32 %v907_v10, 0.0 }
 0x274   : > { %v937_v13 = vcombine.high %v917_v8, %v917_v8  ;;  %v944_v14 = vrot.slane %v917_v8, %v2065_v41  ;;  %v1880_v8 = vpack.c.bf16 %v1061_v7, %v1060_v4 }
 0x275   : > { %v920_v16 = vcombine.high %v916_v9, %v916_v9  ;;  %v927_v17 = vrot.slane %v916_v9, %v2065_v41  ;;  %v1062_v9 = vld [vmem:[%s2510_s3 + $0x10] sm:$0xff] }
 0x276   : > { %v951_v52 = vrot.slane %v937_v13, %v2065_v41  ;;  %v952_v59 = vcombine.high %v944_v14, %v944_v14  ;;  %v1026_v26 = vrot.slane %v944_v14, %v2069_v47  ;;  %v973_v42 = vrot.slane %v944_v14, %v2067_v45  ;;  %v1064_v13 = vld [vmem:[%s2510_s3 + $0x20] sm:$0xff]  ;;  %v1065_v14 = vld [vmem:[%s2510_s3 + $0x28] sm:$0xff] }
 0x277   : > { %v934_v61 = vrot.slane %v920_v16, %v2065_v41  ;;  %v935_v2 = vcombine.high %v927_v17, %v927_v17  ;;  %v1010_v58 = vrot.slane %v927_v17, %v2069_v47  ;;  %v957_v20 = vrot.slane %v927_v17, %v2067_v45  ;;  %v1066_v16 = vld [vmem:[%s2510_s3 + $0x30] sm:$0xff]  ;;  %v1067_v17 = vld [vmem:[%s2510_s3 + $0x38] sm:$0xff] }
 0x278   : > { %v1030_v18 = vrot.slane %v952_v59, %v2069_v47  ;;  %v953_v5 = vcombine.high %v951_v52, %v951_v52  ;;  %v977_v29 = vrot.slane %v952_v59, %v2067_v45  ;;  %v1034_v36 = vrot.slane %v951_v52, %v2069_v47  ;;  %v1068_v59 = vld [vmem:[%s2510_s3 + $0x40] sm:$0xff] }
 0x279   : > { %v1014_v19 = vrot.slane %v935_v2, %v2069_v47  ;;  %v961_v21 = vrot.slane %v935_v2, %v2067_v45  ;;  %v936_v22 = vcombine.high %v934_v61, %v934_v61  ;;  %v1018_v27 = vrot.slane %v934_v61, %v2069_v47 }
 0x27a   : > { %v965_v28 = vrot.slane %v934_v61, %v2067_v45  ;;  %v1041_v37 = vsel %vm583_vm2, %v1030_v18, %v1026_v26  ;;  %v1038_v38 = vrot.slane %v953_v5, %v2069_v47  ;;  %v985_v43 = vrot.slane %v953_v5, %v2067_v45  ;;  %v1069_v61 = vld [vmem:[%s2510_s3 + $0x48] sm:$0xff]  ;;  %v1070_v18 = vld [vmem:[%s2510_s3 + $0x50] sm:$0xff] }
 0x27b   : > { %v986_v30 = vsel %vm581_vm1, %v961_v21, %v957_v20  ;;  %v969_v31 = vrot.slane %v936_v22, %v2067_v45  ;;  %v1039_v32 = vsel %vm583_vm2, %v1014_v19, %v1010_v58  ;;  %v1022_v33 = vrot.slane %v936_v22, %v2069_v47  ;;  %v1513_v47 = vld [vmem:[%s2510_s3 + $0xe0] sm:$0xff]  ;;  %v1071_v58 = vld [vmem:[%s2510_s3 + $0x58] sm:$0xff]  ;;  %v1073_v20 = vld [vmem:[%s2510_s3 + $0x68] sm:$0xff] }
 0x27c   : > { %990 = vrot.lane.b32.xlu0 %v986_v30, %s1961_s9  ;;  %v1042_v46 = vsel %vm583_vm2, %v1038_v38, %v1034_v36  ;;  %v988_v49 = vsel %vm581_vm1, %v977_v29, %v973_v42  ;;  %v981_v50 = vrot.slane %v951_v52, %v2067_v45  ;;  %v1874_v54 = vpack.c.bf16 %v1514_v51, %v1513_v47  ;;  %v1072_v19 = vld [vmem:[%s2510_s3 + $0x60] sm:$0xff]  ;;  %v1074_v22 = vld [vmem:[%s2510_s3 + $0x70] sm:$0xff] }
 0x27d   : > { %v987_v40 = vsel %vm581_vm1, %v969_v31, %v965_v28  ;;  %v1040_v44 = vsel %vm583_vm2, %v1022_v33, %v1018_v27  ;;  %v1883_v11 = vpack.c.bf16 %v1063_v12, %v1062_v9  ;;  %v1886_v15 = vpack.c.bf16 %v1065_v14, %v1064_v13 }
 0x27e   : > { %992 = vrot.lane.b32.xlu1 %v987_v40, %s1961_s9  ;;  %v989_v53 = vsel %vm581_vm1, %v985_v43, %v981_v50  ;;  %1875 = vmatpush3.bf16.msra.mxu0 %v1874_v54  ;;  %v1889_v52 = vpack.c.bf16 %v1067_v17, %v1066_v16  ;;  %v1892_v2 = vpack.c.bf16 %v1069_v61, %v1068_v59 }
 0x27f   : > { %1876 = vmatprep.subr.bf16.mxu0 %v1963_v62  ;;  %v1895_v5 = vpack.c.bf16 %v1071_v58, %v1070_v18  ;;  %v1898_v21 = vpack.c.bf16 %v1073_v20, %v1072_v19  ;;  %v1901_v27 = vpack.c.bf16 %v1075_v24, %v1074_v22 }
 0x280   : > { %994 = vrot.lane.b32.xlu0 %v988_v49, %s1961_s9 }
 0x282   : > { %996 = vrot.lane.b32.xlu1 %v989_v53, %s1961_s9  ;;  %1878 = vmatpush3.bf16.msra.mxu0 %v1877_v57 }
 0x283   : > { %1879 = vmatprep.subr.bf16.mxu0 %v1963_v62 }
 0x2ee   : > { %v991_v60 = vpop.permute.xlu0 %990 }
 0x2ef   : > { %1003 = vst.msk [vmem:[#allocation3] sm:$0x3] %vm1002_vm10, %v991_v60 }
 0x2f0   : > { %1048 = vst.msk [vmem:[#allocation3] sm:$0x6] %vm1047_vm11, %v1039_v32  ;;  %v993_v63 = vpop.permute.xlu1 %992 }
 0x2f1   : > { %1052 = vst.msk [vmem:[#allocation3] sm:$0x1] %vm699_vm7, %v1962_v23 }
 0x2f2   : > { %1056 = vst.msk [vmem:[#allocation3 + $0x2] sm:$0x1] %vm704_vm8, %v1962_v23  ;;  %v995_v0 = vpop.permute.xlu0 %994 }
 0x2f3   : > { %1004 = vst.msk [vmem:[#allocation3 + $0x4] sm:$0x3] %vm1002_vm10, %v993_v63  ;;  %1005 = vst.msk [vmem:[#allocation3 + $0x8] sm:$0x3] %vm1002_vm10, %v995_v0 }
 0x2f4   : > { %1049 = vst.msk [vmem:[#allocation3 + $0x4] sm:$0x6] %vm1047_vm11, %v1040_v44  ;;  %1050 = vst.msk [vmem:[#allocation3 + $0x8] sm:$0x6] %vm1047_vm11, %v1041_v37  ;;  %v997_v1 = vpop.permute.xlu1 %996 }
 0x2f5   : > { %1053 = vst.msk [vmem:[#allocation3 + $0x4] sm:$0x1] %vm699_vm7, %v1962_v23  ;;  %1054 = vst.msk [vmem:[#allocation3 + $0x8] sm:$0x1] %vm699_vm7, %v1962_v23 }
 0x2f6   : > { %1057 = vst.msk [vmem:[#allocation3 + $0x6] sm:$0x1] %vm704_vm8, %v1962_v23  ;;  %1058 = vst.msk [vmem:[#allocation3 + $0xa] sm:$0x1] %vm704_vm8, %v1962_v23 }
 0x2f7   : > { %1006 = vst.msk [vmem:[#allocation3 + $0xc] sm:$0x3] %vm1002_vm10, %v997_v1 }
 0x2f8   : > { %1051 = vst.msk [vmem:[#allocation3 + $0xc] sm:$0x6] %vm1047_vm11, %v1042_v46  ;;  %v1361_v46 = vld [vmem:[%s2511_s4] sm:$0x1] }
 0x2f9   : > { %1055 = vst.msk [vmem:[#allocation3 + $0xc] sm:$0x1] %vm699_vm7, %v1962_v23 }
 0x2fa   : > { %1059 = vst.msk [vmem:[#allocation3 + $0xe] sm:$0x1] %vm704_vm8, %v1962_v23 }
 0x2fc   : > { %v1951_v26 = vld.sshfl [vmem:[#allocation3] sm:$0xf pattern:$0x76325410] }
 0x2fd   : > { %v1948_v3 = vld.sshfl [vmem:[#allocation3 + $0x1] sm:$0xf pattern:$0x76325410] }
 0x300   : > { %v1950_v25 = vld.sshfl [vmem:[#allocation3 + $0x8] sm:$0xf pattern:$0x76325410] }
 0x301   : > { %v1949_v6 = vld.sshfl [vmem:[#allocation3 + $0x9] sm:$0xf pattern:$0x76325410]  ;;  %v1213_v28 = vcombine.low %v1951_v26, %v1950_v25 }
 0x302   : > { %v1121_v10 = vcombine.low %v1948_v3, %v1949_v6 }
 0x304   : > { %1738 = vmatmul.mubr.f32.vlgmr.msra.gmra.mrb[4].mxu0 %v1121_v10 }
 0x305   : > { %1881 = vmatpush3.bf16.msra.mxu0 %v1880_v8  ;;  %1772 = vmatprep.mubr.msk.f32.mxu0 %vm1964_vm9, %v1962_v23 }
 0x306   : > { %1882 = vmatprep.subr.bf16.mxu0 %v1963_v62 }
 0x309   : > { %1884 = vmatpush3.bf16.msra.mxu0 %v1883_v11 }
 0x30a   : > { %1885 = vmatprep.subr.bf16.mxu0 %v1963_v62 }
 0x30d   : > { %1887 = vmatpush3.bf16.msra.mxu0 %v1886_v15 }
 0x30e   : > { %1888 = vmatprep.subr.bf16.mxu0 %v1963_v62 }
 0x311   : > { %1890 = vmatpush3.bf16.msra.mxu0 %v1889_v52 }
 0x312   : > { %1891 = vmatprep.subr.bf16.mxu0 %v1963_v62 }
 0x315   : > { %1893 = vmatpush3.bf16.msra.mxu0 %v1892_v2 }
 0x316   : > { %1894 = vmatprep.subr.bf16.mxu0 %v1963_v62 }
 0x319   : > { %1896 = vmatpush3.bf16.msra.mxu0 %v1895_v5 }
 0x31a   : > { %1897 = vmatprep.subr.bf16.mxu0 %v1963_v62 }
 0x31d   : > { %1899 = vmatpush3.bf16.msra.mxu0 %v1898_v21 }
 0x31e   : > { %1900 = vmatprep.subr.bf16.mxu0 %v1963_v62 }
 0x321   : > { %1902 = vmatpush3.bf16.msra.mxu0 %v1901_v27 }
 0x324   : > { %1773 = vmatmul.mubr.f32.vlgmr.msra.gmra.mrb[4].mxu0 %v1213_v28 }
 0x3f7   : > { %v1281_v29 = vpop.f32.mrb[4].mxu0 }
 0x3f8   : > { %v1285_v30 = vmax.f32 %v1281_v29, 0.0  ;;  %v1774_v31 = vpop.f32.mrb[5].mxu0 }
 0x3fa   : > { %v1287_v32 = vcombine.high %v1285_v30, %v1285_v30  ;;  %v1294_v33 = vrot.slane %v1285_v30, %v2065_v41 }
 0x3fc   : > { %v1301_v34 = vrot.slane %v1287_v32, %v2065_v41  ;;  %1341 = vst.msk [vmem:[#allocation4] sm:$0x2] %vm1340_vm12, %v1294_v33  ;;  %v1311_v35 = vrot.slane %v1294_v33, %v2067_v45  ;;  %v1302_v36 = vcombine.high %v1294_v33, %v1294_v33 }
 0x3fd   : > { %1349 = vst.msk [vmem:[#allocation4 + $0x1] sm:$0x1] %vm704_vm8, %v1962_v23 }
 0x3fe   : > { %1343 = vst.msk [vmem:[#allocation4 + $0x4] sm:$0x2] %vm1340_vm12, %v1301_v34  ;;  %1324 = vrot.lane.b32.xlu0 %v1311_v35, %s1961_s9  ;;  %v1315_v62 = vrot.slane %v1302_v36, %v2067_v45  ;;  %1342 = vst.msk [vmem:[#allocation4 + $0x2] sm:$0x2] %vm1340_vm12, %v1302_v36  ;;  %v1303_v37 = vcombine.high %v1301_v34, %v1301_v34  ;;  %v1319_v41 = vrot.slane %v1301_v34, %v2067_v45 }
 0x3ff   : > { %1351 = vst.msk [vmem:[#allocation4 + $0x5] sm:$0x1] %vm704_vm8, %v1962_v23  ;;  %1350 = vst.msk [vmem:[#allocation4 + $0x3] sm:$0x1] %vm704_vm8, %v1962_v23 }
 0x400   : > { %1326 = vrot.lane.b32.xlu1 %v1315_v62, %s1961_s9  ;;  %1344 = vst.msk [vmem:[#allocation4 + $0x6] sm:$0x2] %vm1340_vm12, %v1303_v37  ;;  %v1323_v38 = vrot.slane %v1303_v37, %v2067_v45  ;;  %v1517_v45 = vld [vmem:[%s2511_s4 + $0x1] sm:$0x1] }
 0x401   : > { %1352 = vst.msk [vmem:[#allocation4 + $0x7] sm:$0x1] %vm704_vm8, %v1962_v23 }
 0x402   : > { %1328 = vrot.lane.b32.xlu0 %v1319_v41, %s1961_s9 }
 0x404   : > { %1330 = vrot.lane.b32.xlu1 %v1323_v38, %s1961_s9  ;;  %v1357_v43 = vld [vmem:[#allocation4 + $0x1] sm:$0x1] }
 0x405   : > { %v1368_v49 = vmul.f32 %v1517_v45, %v1357_v43 }
 0x406   : > { %v1358_v48 = vld [vmem:[#allocation4 + $0x3] sm:$0x1]  ;;  %v1359_v47 = vld [vmem:[#allocation4 + $0x5] sm:$0x1] }
 0x407   : > { %v1369_v53 = vmul.f32 %v1517_v45, %v1358_v48  ;;  %v1370_v60 = vmul.f32 %v1517_v45, %v1359_v47 }
 0x408   : > { %v1360_v55 = vld [vmem:[#allocation4 + $0x7] sm:$0x1] }
 0x409   : > { %v1371_v4 = vmul.f32 %v1517_v45, %v1360_v55 }
 0x470   : > { %v1325_v39 = vpop.permute.xlu0 %1324 }
 0x471   : > { %1336 = vst.msk [vmem:[#allocation4] sm:$0x1] %vm704_vm8, %v1325_v39 }
 0x472   : > { %1345 = vst.msk [vmem:[#allocation4] sm:$0x1] %vm699_vm7, %v1962_v23  ;;  %v1327_v40 = vpop.permute.xlu1 %1326 }
 0x473   : > { %1337 = vst.msk [vmem:[#allocation4 + $0x2] sm:$0x1] %vm704_vm8, %v1327_v40 }
 0x474   : > { %1346 = vst.msk [vmem:[#allocation4 + $0x2] sm:$0x1] %vm699_vm7, %v1962_v23  ;;  %v1329_v42 = vpop.permute.xlu0 %1328 }
 0x475   : > { %1338 = vst.msk [vmem:[#allocation4 + $0x4] sm:$0x1] %vm704_vm8, %v1329_v42 }
 0x476   : > { %1347 = vst.msk [vmem:[#allocation4 + $0x4] sm:$0x1] %vm699_vm7, %v1962_v23  ;;  %v1331_v44 = vpop.permute.xlu1 %1330 }
 0x477   : > { %1339 = vst.msk [vmem:[#allocation4 + $0x6] sm:$0x1] %vm704_vm8, %v1331_v44 }
 0x478   : > { %1348 = vst.msk [vmem:[#allocation4 + $0x6] sm:$0x1] %vm699_vm7, %v1962_v23 }
 0x479   : > { %v1353_v50 = vld [vmem:[#allocation4] sm:$0x1] }
 0x47a   : > { %v1362_v51 = vmul.f32 %v1361_v46, %v1353_v50 }
 0x47b   : > { %v1354_v54 = vld [vmem:[#allocation4 + $0x2] sm:$0x1] }
 0x47c   : > { %v1372_v56 = vadd.f32 %v1368_v49, %v1362_v51  ;;  %v1363_v57 = vmul.f32 %v1361_v46, %v1354_v54 }
 0x47d   : > { %v1355_v63 = vld [vmem:[#allocation4 + $0x4] sm:$0x1] }
 0x47e   : > { %v1377_v0 = vsel %vm1376_vm13, %v1372_v56, 0.0  ;;  %v1373_v1 = vadd.f32 %v1369_v53, %v1363_v57  ;;  %v1364_v3 = vmul.f32 %v1361_v46, %v1355_v63 }
 0x47f   : > { %1378 = vadd.xlane.f32.xlu0 %v1377_v0  ;;  %v1356_v6 = vld [vmem:[#allocation4 + $0x6] sm:$0x1] }
 0x480   : > { %v1380_v23 = vsel %vm1376_vm13, %v1373_v1, 0.0  ;;  %v1374_v7 = vadd.f32 %v1370_v60, %v1364_v3  ;;  %v1365_v8 = vmul.f32 %v1361_v46, %v1356_v6 }
 0x481   : > { %1381 = vadd.xlane.f32.xlu1 %v1380_v23 }
 0x482   : > { %v1383_v10 = vsel %vm1376_vm13, %v1374_v7, 0.0  ;;  %v1375_v9 = vadd.f32 %v1371_v4, %v1365_v8 }
 0x483   : > { %1384 = vadd.xlane.f32.xlu0 %v1383_v10 }
 0x484   : > { %v1386_v12 = vsel %vm1376_vm13, %v1375_v9, 0.0 }
 0x487   : > { %1387 = vadd.xlane.f32.xlu0 %v1386_v12 }
 0x50c   : > { %v1379_v11 = vpop.xlane.xlu0 %1378 }
 0x50d   : > { %v1389_v13 = vsub.f32 0.0, %v1379_v11 }
 0x50e   : > { %v1382_v14 = vpop.xlane.xlu1 %1381 }
 0x50f   : > { %v1393_v15 = vmul.f32 1.442695, %v1389_v13  ;;  %v1390_v16 = vsub.f32 0.0, %v1382_v14 }
 0x510   : > { %v1385_v17 = vpop.xlane.xlu0 %1384 }
 0x511   : > { %1932 = vpow2.f32 %v1393_v15  ;;  %v1395_v52 = vmul.f32 1.442695, %v1390_v16  ;;  %v1391_v59 = vsub.f32 0.0, %v1385_v17 }
 0x513   : > { %1934 = vpow2.f32 %v1395_v52  ;;  %v1397_v61 = vmul.f32 1.442695, %v1391_v59 }
 0x514   : > { %v1388_v2 = vpop.xlane.xlu0 %1387 }
 0x515   : > { %1936 = vpow2.f32 %v1397_v61  ;;  %v1392_v18 = vsub.f32 0.0, %v1388_v2 }
 0x517   : > { %v1399_v58 = vmul.f32 1.442695, %v1392_v18 }
 0x519   : > { %1938 = vpow2.f32 %v1399_v58 }
 0x51b   : > { %v1933_v5 = vpop.eup %1932 }
 0x51c   : > { %v1401_v19 = vadd.f32 1.0, %v1933_v5 }
 0x51d   : > { %v1935_v20 = vpop.eup %1934 }
 0x51e   : > { %1940 = vrcp.f32 %v1401_v19  ;;  %v1402_v21 = vadd.f32 1.0, %v1935_v20 }
 0x51f   : > { %v1937_v22 = vpop.eup %1936 }
 0x520   : > { %1942 = vrcp.f32 %v1402_v21  ;;  %v1403_v24 = vadd.f32 1.0, %v1937_v22 }
 0x522   : > { %1944 = vrcp.f32 %v1403_v24 }
 0x523   : > { %v1939_v25 = vpop.eup %1938 }
 0x524   : > { %v1404_v26 = vadd.f32 1.0, %v1939_v25 }
 0x526   : > { %1946 = vrcp.f32 %v1404_v26 }
 0x528   : > { %v1941_v27 = vpop.eup %1940 }
 0x529   : > { %1410 = vst.msk [vmem:[%s227_s17] sm:$0x1] %vm1409_vm14, %v1941_v27 }
 0x52a   : > { %v1943_v28 = vpop.eup %1942 }
 0x52b   : > { %1411 = vst.msk [vmem:[%s227_s17 + $0x1] sm:$0x1] %vm1409_vm14, %v1943_v28 }
 0x52c   : > { %v1945_v29 = vpop.eup %1944 }
 0x52d   : > { %1412 = vst.msk [vmem:[%s227_s17 + $0x2] sm:$0x1] %vm1409_vm14, %v1945_v29 }
 0x530   : > { %v1947_v30 = vpop.eup %1946 }
 0x531   : > { %1413 = vst.msk [vmem:[%s227_s17 + $0x3] sm:$0x1] %vm1409_vm14, %v1947_v30 }
 0x532 PF: > { %s15_s18 = sadd.s32 1, %s1958_s18  }
 0x533   : > { %p12_p4 = scmp.ge.s32.totalorder %s15_s18, 4  }
 0x535   :  { %14 = sbr.rel (!%p12_p4) target bundleno = 1 (0x1), region = 74 }

</bundles_post_ra>
